<compile_context>
chip_gen: v5e
topology: v5e:2x2
jax: 0.10.0
libtpu: 0.0.40
codegen_flags: <defaults>
</compile_context>

<pallas_src>
from functools import partial

import jax
import jax.numpy as jnp
from jax.experimental import pallas as pl
from jax.experimental.pallas import tpu as pltpu


LRELU_SLOPE = 0.01  # TODO(synk): PyTorch nn.LeakyReLU default; original unknown.


# ----------------------------------------------------------------------------
# Kernel 1: K-tiled patch-embed for c0 / c1 / f0  ->  concatenated (M, 4D) slab
# ----------------------------------------------------------------------------
def _down_kernel(ac0_ref, ac1_ref, af_ref, dn_ref, wc_ref, bc_ref, wf_ref, bf_ref,
                 feat_ref, acc_c0, acc_c1, acc_f, *, slope):
    k = pl.program_id(0)

    @pl.when(k == 0)
    def _init():
        acc_c0[...] = jnp.zeros_like(acc_c0)
        acc_c1[...] = jnp.zeros_like(acc_c1)
        acc_f[...] = jnp.zeros_like(acc_f)

    # bf16 operands, f32 accumulation on the MXU; Wc tile reused for c0 and c1.
    wc = wc_ref[...]
    acc_c0[...] += jnp.dot(ac0_ref[...], wc, preferred_element_type=jnp.float32)
    acc_c1[...] += jnp.dot(ac1_ref[...], wc, preferred_element_type=jnp.float32)
    acc_f[...] += jnp.dot(af_ref[...], wf_ref[...], preferred_element_type=jnp.float32)

    @pl.when(k == pl.num_programs(0) - 1)
    def _finalize():
        def bias_act(acc, b_ref):                      # f32 VPU math (v5e-safe)
            x = acc[...] + b_ref[...]
            return jnp.where(x >= 0, x, slope * x)     # LeakyReLU

        # Concatenated fusion operand [c_fea0 | f_fea0 | c_fea1 | down_feature]
        # written with a single lane-dense store.
        feat_ref[...] = jnp.concatenate(
            [bias_act(acc_c0, bc_ref),
             bias_act(acc_f, bf_ref),
             bias_act(acc_c1, bc_ref),
             dn_ref[...]],
            axis=-1,
        ).astype(feat_ref.dtype)


# ----------------------------------------------------------------------------
# Kernel 2: N-tiled fusion 1x1-conv matmul (single 4D-deep dot) + residual
# ----------------------------------------------------------------------------
def _up_kernel(feat_ref, wu_ref, res_ref, o_ref):
    f = feat_ref[...].astype(jnp.bfloat16)             # tiny (M, 4D), resident
    y = jnp.dot(f, wu_ref[...], preferred_element_type=jnp.float32)
    # bias (bu) is pre-folded into the residual in the wrapper; res is aliased
    # with o_ref, read-before-write within this block.
    o_ref[...] = (y + res_ref[...]).astype(o_ref.dtype)


# ----------------------------------------------------------------------------
# Layout plumbing (one reshape/transpose pass per tensor, XLA side)
# ----------------------------------------------------------------------------
def _patches(x, p):
    """NCHW -> (B*h*w, C*p*p) with feature order (c, ki, kj) (Conv2d k=p, s=p)."""
    B, C, H, W = x.shape
    h, w = H // p, W // p
    return (x.reshape(B, C, h, p, w, p)
             .transpose(0, 2, 4, 1, 3, 5)
             .reshape(B * h * w, C * p * p))


def _pixel_shuffle(y, B, h, w, c, p):
    """(B*h*w, c*p*p) -> NCHW pixel-shuffle: out[b,c,i*p+ki,j*p+kj]."""
    return (y.reshape(B, h, w, c, p, p)
             .transpose(0, 3, 1, 4, 2, 5)
             .reshape(B, c, h * p, w * p))


def _choose_tile(total, candidates):
    for t in candidates:
        if t <= total and total % t == 0:
            return t
    return total


# ----------------------------------------------------------------------------
# Forward
# ----------------------------------------------------------------------------
def thstnet_fwd(params, c0, f0, c1, down_feature, up_feature, patchsize, in_dim):
    p = patchsize
    B, C, H, W = c0.shape
    h, w = H // p, W // p
    M = B * h * w

    wc = params["c_down"]["w"]
    bc = params["c_down"]["b"].reshape(1, -1)
    wf = params["f_down"]["w"]
    bf = params["f_down"]["b"].reshape(1, -1)
    wu = params["up_swin"]["w"]
    bu = params["up_swin"]["b"].reshape(1, -1)

    K = wc.shape[0]           # in_dim * p * p
    D = wc.shape[1]           # embed dim (2 * in_dim)
    N = wu.shape[1]           # in_dim * p * p

    # bf16 feed for the big streamed matmul operands (casts fuse with the
    # patch-extraction copies); no wrapper concat of the coarse patch slabs.
    ac0 = _patches(c0, p).astype(jnp.bfloat16)
    ac1 = _patches(c1, p).astype(jnp.bfloat16)
    af = _patches(f0, p).astype(jnp.bfloat16)
    dn = down_feature.transpose(0, 2, 3, 1).reshape(M, D).astype(jnp.float32)

    # Fold the fusion bias into the residual (kernel does a single add).
    res = _patches(up_feature, p).astype(jnp.float32) + bu

    # Lane-dense output: pad N up to a multiple of 128 only if needed (toy
    # shapes); the module defaults already satisfy it.
    N_pad = ((N + 127) // 128) * 128
    if N_pad != N:
        wu = jnp.pad(wu, ((0, 0), (0, N_pad - N)))
        res = jnp.pad(res, ((0, 0), (0, N_pad - N)))
    wu_b = wu.astype(jnp.bfloat16)

    # Generation-safe tile sizes (multiples of 128; double-buffered working set
    # stays far below v7x's 64 MiB VMEM while big enough for v5e/v6e roofline).
    tk = _choose_tile(K, (512, 256, 128))
    tn = _choose_tile(N_pad, (2048, 1024, 512, 256, 128))

    # ---- Kernel 1: K-tiled patch embed -> concatenated (M, 4D) features ----
    feat = pl.pallas_call(
        partial(_down_kernel, slope=LRELU_SLOPE),
        out_shape=jax.ShapeDtypeStruct((M, 4 * D), jnp.float32),
        grid=(K // tk,),
        in_specs=[
            pl.BlockSpec((M, tk), lambda k: (0, k)),    # c0 patches
            pl.BlockSpec((M, tk), lambda k: (0, k)),    # c1 patches
            pl.BlockSpec((M, tk), lambda k: (0, k)),    # f0 patches
            pl.BlockSpec((M, D), lambda k: (0, 0)),     # down_feature
            pl.BlockSpec((tk, D), lambda k: (k, 0)),    # Wc tile
            pl.BlockSpec((1, D), lambda k: (0, 0)),     # bc
            pl.BlockSpec((tk, D), lambda k: (k, 0)),    # Wf tile
            pl.BlockSpec((1, D), lambda k: (0, 0)),     # bf
        ],
        out_specs=pl.BlockSpec((M, 4 * D), lambda k: (0, 0)),
        scratch_shapes=[pltpu.VMEM((M, D), jnp.float32)] * 3,
        compiler_params=pltpu.CompilerParams(
            dimension_semantics=("arbitrary",),         # K is a reduction axis
            vmem_limit_bytes=64 * 1024 * 1024,
        ),
    )(ac0, ac1, af, dn, wc.astype(jnp.bfloat16), bc, wf.astype(jnp.bfloat16), bf)

    # ---- Kernel 2: N-tiled fusion matmul (+ folded bias + residual) ----
    y = pl.pallas_call(
        _up_kernel,
        out_shape=jax.ShapeDtypeStruct((M, N_pad), jnp.float32),
        grid=(N_pad // tn,),
        in_specs=[
            pl.BlockSpec((M, 4 * D), lambda j: (0, 0)),   # features (resident)
            pl.BlockSpec((4 * D, tn), lambda j: (0, j)),  # Wu tile (bf16)
            pl.BlockSpec((M, tn), lambda j: (0, j)),      # residual (+bias)
        ],
        out_specs=pl.BlockSpec((M, tn), lambda j: (0, j)),
        input_output_aliases={2: 0},                      # res buffer -> output
        compiler_params=pltpu.CompilerParams(
            dimension_semantics=("parallel",),            # megacore on v7x
            vmem_limit_bytes=64 * 1024 * 1024,
        ),
    )(feat, wu_b, res)

    if N_pad != N:
        y = y[:, :N]

    return _pixel_shuffle(y, B, h, w, in_dim, p)


# ----------------------------------------------------------------------------
# Pure-JAX f32 reference (same reconstructed module semantics)
# ----------------------------------------------------------------------------
def reference_fwd(params, c0, f0, c1, down_feature, up_feature, patchsize, in_dim):
    p = patchsize
    B, C, H, W = c0.shape
    h, w = H // p, W // p
    M = B * h * w
    wc, bc = params["c_down"]["w"], params["c_down"]["b"]
    wf, bf = params["f_down"]["w"], params["f_down"]["b"]
    wu, bu = params["up_swin"]["w"], params["up_swin"]["b"]
    D = wc.shape[1]

    def embed(x, wgt, b):
        z = _patches(x, p) @ wgt + b
        return jnp.where(z >= 0, z, LRELU_SLOPE * z)

    c_fea0 = embed(c0, wc, bc)
    c_fea1 = embed(c1, wc, bc)
    f_fea0 = embed(f0, wf, bf)
    dn = down_feature.transpose(0, 2, 3, 1).reshape(M, D)
    feat = jnp.concatenate([c_fea0, f_fea0, c_fea1, dn], axis=1)
    y = feat @ wu + bu + _patches(up_feature, p)
    return _pixel_shuffle(y, B, h, w, in_dim, p)


# ----------------------------------------------------------------------------
# Deterministic parameter init (PyTorch-style uniform fan-in init)
# ----------------------------------------------------------------------------
def init_params(key, in_dim, patchsize):
    p = patchsize
    embed_dim = 2 * in_dim
    k_cdw, k_cdb, k_fdw, k_fdb, k_uw, k_ub = jax.random.split(key, 6)

    def dense(kw, kb, fan_in, fan_out):
        scale = 1.0 / jnp.sqrt(jnp.float32(fan_in))
        return {
            "w": jax.random.uniform(kw, (fan_in, fan_out), jnp.float32, -scale, scale),
            "b": jax.random.uniform(kb, (fan_out,), jnp.float32, -scale, scale),
        }

    return {
        "c_down": dense(k_cdw, k_cdb, in_dim * p * p, embed_dim),
        "f_down": dense(k_fdw, k_fdb, in_dim * p * p, embed_dim),
        "up_swin": dense(k_uw, k_ub, 4 * embed_dim, in_dim * p * p),
    }


# ----------------------------------------------------------------------------
# Main
# ----------------------------------------------------------------------------
if __name__ == "__main__":
    B, in_dim, H, W = 2, 4, 16, 16
    patchsize = 4
    embed_dim = 2 * in_dim
    h, w = H // patchsize, W // patchsize

    key = jax.random.PRNGKey(0)
    kp, k0, k1, k2, k3, k4 = jax.random.split(key, 6)

    params = init_params(kp, in_dim, patchsize)

    c0 = jax.random.normal(k0, (B, in_dim, H, W), jnp.float32)            # coarse t0
    f0 = jax.random.normal(k1, (B, in_dim, H, W), jnp.float32)            # fine   t0
    c1 = jax.random.normal(k2, (B, in_dim, H, W), jnp.float32)            # coarse t1
    down_feature = jax.random.normal(k3, (B, embed_dim, h, w), jnp.float32)
    up_feature = jax.random.normal(k4, (B, in_dim, H, W), jnp.float32)

    fwd = jax.jit(partial(thstnet_fwd, patchsize=patchsize, in_dim=in_dim))
    out = fwd(params, c0, f0, c1, down_feature, up_feature)
    jax.block_until_ready(out)

    assert out.shape == (B, in_dim, H, W), out.shape
    assert out.dtype == jnp.float32

    # Sanity check against the pure-JAX f32 reference (loose tol: bf16 MXU feed).
    ref = reference_fwd(params, c0, f0, c1, down_feature, up_feature,
                        patchsize, in_dim)
    max_err = float(jnp.max(jnp.abs(out - ref)))
    assert max_err < 2e-1, f"max abs error {max_err}"

    print("KERNEL_OK")
</pallas_src>

<mosaic_0001>
module attributes {stable_mosaic.version = 11 : i64} {
  func.func @_down_kernel(%arg0: i32, %arg1: memref<32x64xbf16, #tpu.memory_space<vmem>>, %arg2: memref<32x64xbf16, #tpu.memory_space<vmem>>, %arg3: memref<32x64xbf16, #tpu.memory_space<vmem>>, %arg4: memref<32x8xf32, #tpu.memory_space<vmem>>, %arg5: memref<64x8xbf16, #tpu.memory_space<vmem>>, %arg6: memref<1x8xf32, #tpu.memory_space<vmem>>, %arg7: memref<64x8xbf16, #tpu.memory_space<vmem>>, %arg8: memref<1x8xf32, #tpu.memory_space<vmem>>, %arg9: memref<32x32xf32, #tpu.memory_space<vmem>>, %arg10: memref<32x8xf32, #tpu.memory_space<vmem>>, %arg11: memref<32x8xf32, #tpu.memory_space<vmem>>, %arg12: memref<32x8xf32, #tpu.memory_space<vmem>>) attributes {dimension_semantics = [#tpu.dimension_semantics<arbitrary>], iteration_bounds = array<i64: 1>, scalar_prefetch = 0 : i64, scratch_operands = 3 : i64, tpu.core_type = #tpu.core_type<tc>, window_params = [{transform_indices = @transform_0, window_bounds = array<i64: 32, 64>}, {transform_indices = @transform_1, window_bounds = array<i64: 32, 64>}, {transform_indices = @transform_2, window_bounds = array<i64: 32, 64>}, {pipeline_mode = #tpu.pipeline_mode<synchronous>, transform_indices = @transform_3, window_bounds = array<i64: 32, 8>}, {transform_indices = @transform_4, window_bounds = array<i64: 64, 8>}, {pipeline_mode = #tpu.pipeline_mode<synchronous>, transform_indices = @transform_5, window_bounds = array<i64: 1, 8>}, {transform_indices = @transform_6, window_bounds = array<i64: 64, 8>}, {pipeline_mode = #tpu.pipeline_mode<synchronous>, transform_indices = @transform_7, window_bounds = array<i64: 1, 8>}, {pipeline_mode = #tpu.pipeline_mode<synchronous>, transform_indices = @transform_8, window_bounds = array<i64: 32, 32>}]} {
    %c0_i32 = arith.constant 0 : i32
    %0 = arith.cmpi eq, %arg0, %c0_i32 : i32
    %1 = arith.extui %0 : i1 to i32
    %c0_i32_0 = arith.constant 0 : i32
    %2 = arith.cmpi ne, %1, %c0_i32_0 : i32
    scf.if %2 {
      %cst_26 = arith.constant 0.000000e+00 : f32
      %23 = vector.broadcast %cst_26 : f32 to vector<32x8xf32>
      %c0_27 = arith.constant 0 : index
      %c0_28 = arith.constant 0 : index
      %24 = vector.load %arg10[%c0_27, %c0_28] : memref<32x8xf32, #tpu.memory_space<vmem>>, vector<32x8xf32>
      tpu.vector_store %arg10[%c0_27, %c0_28], %23 {strides = array<i32>} : memref<32x8xf32, #tpu.memory_space<vmem>>, vector<32x8xf32>,
      %cst_29 = arith.constant 0.000000e+00 : f32
      %25 = vector.broadcast %cst_29 : f32 to vector<32x8xf32>
      %c0_30 = arith.constant 0 : index
      %c0_31 = arith.constant 0 : index
      %26 = vector.load %arg11[%c0_30, %c0_31] : memref<32x8xf32, #tpu.memory_space<vmem>>, vector<32x8xf32>
      tpu.vector_store %arg11[%c0_30, %c0_31], %25 {strides = array<i32>} : memref<32x8xf32, #tpu.memory_space<vmem>>, vector<32x8xf32>,
      %cst_32 = arith.constant 0.000000e+00 : f32
      %27 = vector.broadcast %cst_32 : f32 to vector<32x8xf32>
      %c0_33 = arith.constant 0 : index
      %c0_34 = arith.constant 0 : index
      %28 = vector.load %arg12[%c0_33, %c0_34] : memref<32x8xf32, #tpu.memory_space<vmem>>, vector<32x8xf32>
      tpu.vector_store %arg12[%c0_33, %c0_34], %27 {strides = array<i32>} : memref<32x8xf32, #tpu.memory_space<vmem>>, vector<32x8xf32>,
    } else {
    }
    %c0 = arith.constant 0 : index
    %c0_1 = arith.constant 0 : index
    %3 = vector.load %arg5[%c0, %c0_1] : memref<64x8xbf16, #tpu.memory_space<vmem>>, vector<64x8xbf16>
    %c0_2 = arith.constant 0 : index
    %c0_3 = arith.constant 0 : index
    %4 = vector.load %arg10[%c0_2, %c0_3] : memref<32x8xf32, #tpu.memory_space<vmem>>, vector<32x8xf32>
    %c0_4 = arith.constant 0 : index
    %c0_5 = arith.constant 0 : index
    %5 = vector.load %arg1[%c0_4, %c0_5] : memref<32x64xbf16, #tpu.memory_space<vmem>>, vector<32x64xbf16>
    %cst = arith.constant dense<0.000000e+00> : vector<32x8xf32>
    %6 = tpu.matmul %5, %3, %cst {dimension_numbers = #tpu.dot_dimension_numbers<[1], [0], [0], [1], [0, 0, 1, 1], [], []>} : vector<32x64xbf16>, vector<64x8xbf16>, vector<32x8xf32> -> vector<32x8xf32>
    %7 = arith.addf %4, %6 : vector<32x8xf32>
    %c0_6 = arith.constant 0 : index
    %c0_7 = arith.constant 0 : index
    %8 = vector.load %arg10[%c0_6, %c0_7] : memref<32x8xf32, #tpu.memory_space<vmem>>, vector<32x8xf32>
    tpu.vector_store %arg10[%c0_6, %c0_7], %7 {strides = array<i32>} : memref<32x8xf32, #tpu.memory_space<vmem>>, vector<32x8xf32>,
    %c0_8 = arith.constant 0 : index
    %c0_9 = arith.constant 0 : index
    %9 = vector.load %arg11[%c0_8, %c0_9] : memref<32x8xf32, #tpu.memory_space<vmem>>, vector<32x8xf32>
    %c0_10 = arith.constant 0 : index
    %c0_11 = arith.constant 0 : index
    %10 = vector.load %arg2[%c0_10, %c0_11] : memref<32x64xbf16, #tpu.memory_space<vmem>>, vector<32x64xbf16>
    %cst_12 = arith.constant dense<0.000000e+00> : vector<32x8xf32>
    %11 = tpu.matmul %10, %3, %cst_12 {dimension_numbers = #tpu.dot_dimension_numbers<[1], [0], [0], [1], [0, 0, 1, 1], [], []>} : vector<32x64xbf16>, vector<64x8xbf16>, vector<32x8xf32> -> vector<32x8xf32>
    %12 = arith.addf %9, %11 : vector<32x8xf32>
    %c0_13 = arith.constant 0 : index
    %c0_14 = arith.constant 0 : index
    %13 = vector.load %arg11[%c0_13, %c0_14] : memref<32x8xf32, #tpu.memory_space<vmem>>, vector<32x8xf32>
    tpu.vector_store %arg11[%c0_13, %c0_14], %12 {strides = array<i32>} : memref<32x8xf32, #tpu.memory_space<vmem>>, vector<32x8xf32>,
    %c0_15 = arith.constant 0 : index
    %c0_16 = arith.constant 0 : index
    %14 = vector.load %arg12[%c0_15, %c0_16] : memref<32x8xf32, #tpu.memory_space<vmem>>, vector<32x8xf32>
    %c0_17 = arith.constant 0 : index
    %c0_18 = arith.constant 0 : index
    %15 = vector.load %arg3[%c0_17, %c0_18] : memref<32x64xbf16, #tpu.memory_space<vmem>>, vector<32x64xbf16>
    %c0_19 = arith.constant 0 : index
    %c0_20 = arith.constant 0 : index
    %16 = vector.load %arg7[%c0_19, %c0_20] : memref<64x8xbf16, #tpu.memory_space<vmem>>, vector<64x8xbf16>
    %cst_21 = arith.constant dense<0.000000e+00> : vector<32x8xf32>
    %17 = tpu.matmul %15, %16, %cst_21 {dimension_numbers = #tpu.dot_dimension_numbers<[1], [0], [0], [1], [0, 0, 1, 1], [], []>} : vector<32x64xbf16>, vector<64x8xbf16>, vector<32x8xf32> -> vector<32x8xf32>
    %18 = arith.addf %14, %17 : vector<32x8xf32>
    %c0_22 = arith.constant 0 : index
    %c0_23 = arith.constant 0 : index
    %19 = vector.load %arg12[%c0_22, %c0_23] : memref<32x8xf32, #tpu.memory_space<vmem>>, vector<32x8xf32>
    tpu.vector_store %arg12[%c0_22, %c0_23], %18 {strides = array<i32>} : memref<32x8xf32, #tpu.memory_space<vmem>>, vector<32x8xf32>,
    %c0_i32_24 = arith.constant 0 : i32
    %20 = arith.cmpi eq, %arg0, %c0_i32_24 : i32
    %21 = arith.extui %20 : i1 to i32
    %c0_i32_25 = arith.constant 0 : i32
    %22 = arith.cmpi ne, %21, %c0_i32_25 : i32
    scf.if %22 {
      %c0_26 = arith.constant 0 : index
      %c0_27 = arith.constant 0 : index
      %23 = vector.load %arg10[%c0_26, %c0_27] : memref<32x8xf32, #tpu.memory_space<vmem>>, vector<32x8xf32>
      %c0_28 = arith.constant 0 : index
      %c0_29 = arith.constant 0 : index
      %24 = vector.load %arg6[%c0_28, %c0_29] : memref<1x8xf32, #tpu.memory_space<vmem>>, vector<1x8xf32>
      %25 = vector.broadcast %24 : vector<1x8xf32> to vector<32x8xf32>
      %26 = arith.addf %23, %25 : vector<32x8xf32>
      %cst_30 = arith.constant 0.000000e+00 : f32
      %27 = vector.broadcast %cst_30 : f32 to vector<32x8xf32>
      %28 = arith.cmpf oge, %26, %27 : vector<32x8xf32>
      %cst_31 = arith.constant 0.00999999977 : f32
      %29 = vector.broadcast %cst_31 : f32 to vector<32x8xf32>
      %30 = arith.mulf %29, %26 : vector<32x8xf32>
      %31 = arith.select %28, %26, %30 : vector<32x8xi1>, vector<32x8xf32>
      %c0_32 = arith.constant 0 : index
      %c0_33 = arith.constant 0 : index
      %32 = vector.load %arg12[%c0_32, %c0_33] : memref<32x8xf32, #tpu.memory_space<vmem>>, vector<32x8xf32>
      %c0_34 = arith.constant 0 : index
      %c0_35 = arith.constant 0 : index
      %33 = vector.load %arg8[%c0_34, %c0_35] : memref<1x8xf32, #tpu.memory_space<vmem>>, vector<1x8xf32>
      %34 = vector.broadcast %33 : vector<1x8xf32> to vector<32x8xf32>
      %35 = arith.addf %32, %34 : vector<32x8xf32>
      %cst_36 = arith.constant 0.000000e+00 : f32
      %36 = vector.broadcast %cst_36 : f32 to vector<32x8xf32>
      %37 = arith.cmpf oge, %35, %36 : vector<32x8xf32>
      %cst_37 = arith.constant 0.00999999977 : f32
      %38 = vector.broadcast %cst_37 : f32 to vector<32x8xf32>
      %39 = arith.mulf %38, %35 : vector<32x8xf32>
      %40 = arith.select %37, %35, %39 : vector<32x8xi1>, vector<32x8xf32>
      %c0_38 = arith.constant 0 : index
      %c0_39 = arith.constant 0 : index
      %41 = vector.load %arg11[%c0_38, %c0_39] : memref<32x8xf32, #tpu.memory_space<vmem>>, vector<32x8xf32>
      %c0_40 = arith.constant 0 : index
      %c0_41 = arith.constant 0 : index
      %42 = vector.load %arg6[%c0_40, %c0_41] : memref<1x8xf32, #tpu.memory_space<vmem>>, vector<1x8xf32>
      %43 = vector.broadcast %42 : vector<1x8xf32> to vector<32x8xf32>
      %44 = arith.addf %41, %43 : vector<32x8xf32>
      %cst_42 = arith.constant 0.000000e+00 : f32
      %45 = vector.broadcast %cst_42 : f32 to vector<32x8xf32>
      %46 = arith.cmpf oge, %44, %45 : vector<32x8xf32>
      %cst_43 = arith.constant 0.00999999977 : f32
      %47 = vector.broadcast %cst_43 : f32 to vector<32x8xf32>
      %48 = arith.mulf %47, %44 : vector<32x8xf32>
      %49 = arith.select %46, %44, %48 : vector<32x8xi1>, vector<32x8xf32>
      %c0_44 = arith.constant 0 : index
      %c0_45 = arith.constant 0 : index
      %50 = vector.load %arg4[%c0_44, %c0_45] : memref<32x8xf32, #tpu.memory_space<vmem>>, vector<32x8xf32>
      %51 = tpu.concatenate %31, %40, %49, %50 in 1 : vector<32x8xf32>, vector<32x8xf32>, vector<32x8xf32>, vector<32x8xf32> -> vector<32x32xf32>
      %c0_46 = arith.constant 0 : index
      %c0_47 = arith.constant 0 : index
      %52 = vector.load %arg9[%c0_46, %c0_47] : memref<32x32xf32, #tpu.memory_space<vmem>>, vector<32x32xf32>
      tpu.vector_store %arg9[%c0_46, %c0_47], %51 {strides = array<i32>} : memref<32x32xf32, #tpu.memory_space<vmem>>, vector<32x32xf32>,
    } else {
    }
    return
  }
  func.func @transform_0(%arg0: i32) -> (i32, i32) {
    %c0_i32 = arith.constant 0 : i32
    %c0_i32_0 = arith.constant 0 : i32
    return %c0_i32, %arg0 : i32, i32
  }
  func.func @transform_1(%arg0: i32) -> (i32, i32) {
    %c0_i32 = arith.constant 0 : i32
    %c0_i32_0 = arith.constant 0 : i32
    return %c0_i32, %arg0 : i32, i32
  }
  func.func @transform_2(%arg0: i32) -> (i32, i32) {
    %c0_i32 = arith.constant 0 : i32
    %c0_i32_0 = arith.constant 0 : i32
    return %c0_i32, %arg0 : i32, i32
  }
  func.func @transform_3(%arg0: i32) -> (i32, i32) {
    %c0_i32 = arith.constant 0 : i32
    %c0_i32_0 = arith.constant 0 : i32
    %c0_i32_1 = arith.constant 0 : i32
    return %c0_i32, %c0_i32_0 : i32, i32
  }
  func.func @transform_4(%arg0: i32) -> (i32, i32) {
    %c0_i32 = arith.constant 0 : i32
    %c0_i32_0 = arith.constant 0 : i32
    return %arg0, %c0_i32 : i32, i32
  }
  func.func @transform_5(%arg0: i32) -> (i32, i32) {
    %c0_i32 = arith.constant 0 : i32
    %c0_i32_0 = arith.constant 0 : i32
    %c0_i32_1 = arith.constant 0 : i32
    return %c0_i32, %c0_i32_0 : i32, i32
  }
  func.func @transform_6(%arg0: i32) -> (i32, i32) {
    %c0_i32 = arith.constant 0 : i32
    %c0_i32_0 = arith.constant 0 : i32
    return %arg0, %c0_i32 : i32, i32
  }
  func.func @transform_7(%arg0: i32) -> (i32, i32) {
    %c0_i32 = arith.constant 0 : i32
    %c0_i32_0 = arith.constant 0 : i32
    %c0_i32_1 = arith.constant 0 : i32
    return %c0_i32, %c0_i32_0 : i32, i32
  }
  func.func @transform_8(%arg0: i32) -> (i32, i32) {
    %c0_i32 = arith.constant 0 : i32
    %c0_i32_0 = arith.constant 0 : i32
    %c0_i32_1 = arith.constant 0 : i32
    return %c0_i32, %c0_i32_0 : i32, i32
  }
}

module attributes {stable_mosaic.version = 11 : i64} {
  func.func @_up_kernel(%arg0: i32, %arg1: memref<32x32xf32, #tpu.memory_space<vmem>>, %arg2: memref<32x128xbf16, #tpu.memory_space<vmem>>, %arg3: memref<32x128xf32, #tpu.memory_space<vmem>>, %arg4: memref<32x128xf32, #tpu.memory_space<vmem>>) attributes {dimension_semantics = [#tpu.dimension_semantics<parallel>], iteration_bounds = array<i64: 1>, scalar_prefetch = 0 : i64, scratch_operands = 0 : i64, tpu.core_type = #tpu.core_type<tc>, window_params = [{pipeline_mode = #tpu.pipeline_mode<synchronous>, transform_indices = @transform_0, window_bounds = array<i64: 32, 32>}, {transform_indices = @transform_1, window_bounds = array<i64: 32, 128>}, {transform_indices = @transform_2, window_bounds = array<i64: 32, 128>}, {transform_indices = @transform_3, window_bounds = array<i64: 32, 128>}]} {
    %c0 = arith.constant 0 : index
    %c0_0 = arith.constant 0 : index
    %0 = vector.load %arg1[%c0, %c0_0] : memref<32x32xf32, #tpu.memory_space<vmem>>, vector<32x32xf32>
    %1 = arith.truncf %0 : vector<32x32xf32> to vector<32x32xbf16>
    %c0_1 = arith.constant 0 : index
    %c0_2 = arith.constant 0 : index
    %2 = vector.load %arg2[%c0_1, %c0_2] : memref<32x128xbf16, #tpu.memory_space<vmem>>, vector<32x128xbf16>
    %cst = arith.constant dense<0.000000e+00> : vector<32x128xf32>
    %3 = tpu.matmul %1, %2, %cst {dimension_numbers = #tpu.dot_dimension_numbers<[1], [0], [0], [1], [0, 0, 1, 1], [], []>} : vector<32x32xbf16>, vector<32x128xbf16>, vector<32x128xf32> -> vector<32x128xf32>
    %c0_3 = arith.constant 0 : index
    %c0_4 = arith.constant 0 : index
    %4 = vector.load %arg3[%c0_3, %c0_4] : memref<32x128xf32, #tpu.memory_space<vmem>>, vector<32x128xf32>
    %5 = arith.addf %3, %4 : vector<32x128xf32>
    %c0_5 = arith.constant 0 : index
    %c0_6 = arith.constant 0 : index
    %6 = vector.load %arg4[%c0_5, %c0_6] : memref<32x128xf32, #tpu.memory_space<vmem>>, vector<32x128xf32>
    tpu.vector_store %arg4[%c0_5, %c0_6], %5 {strides = array<i32>} : memref<32x128xf32, #tpu.memory_space<vmem>>, vector<32x128xf32>,
    return
  }
  func.func @transform_0(%arg0: i32) -> (i32, i32) {
    %c0_i32 = arith.constant 0 : i32
    %c0_i32_0 = arith.constant 0 : i32
    %c0_i32_1 = arith.constant 0 : i32
    return %c0_i32, %c0_i32_0 : i32, i32
  }
  func.func @transform_1(%arg0: i32) -> (i32, i32) {
    %c0_i32 = arith.constant 0 : i32
    %c0_i32_0 = arith.constant 0 : i32
    return %c0_i32, %arg0 : i32, i32
  }
  func.func @transform_2(%arg0: i32) -> (i32, i32) {
    %c0_i32 = arith.constant 0 : i32
    %c0_i32_0 = arith.constant 0 : i32
    return %c0_i32, %arg0 : i32, i32
  }
  func.func @transform_3(%arg0: i32) -> (i32, i32) {
    %c0_i32 = arith.constant 0 : i32
    %c0_i32_0 = arith.constant 0 : i32
    return %c0_i32, %arg0 : i32, i32
  }
}

</mosaic_0001>

<bundles_post_ra>
// kernel: thstnet_fwd.3
= control target key start
LH: loop header
LB: loop body
LE: loop exit
PB: predicated region body
PF: predicated region fallthrough
CT: control target
= control target key end

     0   :  { %vm41_vm0 = vcmask 261120   ;;  %s151_s1 = inlined_call_operand.vmem [shape: bf16[32,128], index: 1, kind: input, shape index: {}]   ;;  %s152_s0 = inlined_call_operand.vmem [shape: f32[32,32], index: 0, kind: input, shape index: {}]   ;;  %s153_s2 = inlined_call_operand.vmem [shape: f32[32,128], index: 2, kind: input, shape index: {}, may-alias: {2,3}]   ;;  %s154_s3 = inlined_call_operand.vmem [shape: f32[32,128], index: 3, kind: output, shape index: {}, may-alias: {2,3}]  }
   0x1   :  { %v86_v0 = vld [vmem:[%s151_s1 + $0x8] sm:$0xff]  ;;  %v85_v1 = vld [vmem:[%s151_s1] sm:$0xff]  ;;  %v17_v4 = vld [vmem:[%s152_s0 + $0x10] sm:$0xff] }
   0x2   :  { %v15_v2 = vld [vmem:[%s152_s0] sm:$0xff]  ;;  %54 = vmatpush.bf16.msra.mxu0 %v86_v0  ;;  %87 = vmatpush.bf16.msra.mxu1 %v86_v0  ;;  %v16_v3 = vld [vmem:[%s152_s0 + $0x8] sm:$0xff]  ;;  %v18_v5 = vld [vmem:[%s152_s0 + $0x18] sm:$0xff] }
   0x3   :  { %v19_v6 = vpack.c.bf16 %v16_v3, %v15_v2  ;;  %v20_v7 = vpack.c.bf16 %v18_v5, %v17_v4  ;;  %v25_v8 = vld [vmem:[%s153_s2] sm:$0xff]  ;;  %v27_v9 = vld [vmem:[%s153_s2 + $0x10] sm:$0xff] }
   0x6   :  { %55 = vmatpush.bf16.msra.mxu0 %v85_v1  ;;  %88 = vmatpush.bf16.msra.mxu1 %v85_v1 }
   0x9   :  { %83 = vmatmul.msk.bf16.vlgmr.msra.gmra.mxu0 %vm41_vm0, %v19_v6  ;;  %84 = vmatmul.msk.bf16.vlgmr.msra.gmra.mxu1 %vm41_vm0, %v20_v7 }
  0x86   :  { %v57_v10 = vpop.f32.mrf.mxu0  ;;  %v62_v11 = vpop.f32.mrf.mxu1 }
  0x87   :  { %v58_v12 = vadd.f32 %v57_v10, %v25_v8  ;;  %v63_v13 = vadd.f32 %v62_v11, %v27_v9 }
  0x89   :  { %67 = vst [vmem:[%s154_s3] sm:$0xff] %v58_v12 }
  0x8a   :  { %69 = vst [vmem:[%s154_s3 + $0x10] sm:$0xff] %v63_v13 }
  0x8e   :  { %v59_v16 = vpop.f32.mrf.mxu0  ;;  %v64_v17 = vpop.f32.mrf.mxu1 }
  0x91   :  { %v26_v14 = vld [vmem:[%s153_s2 + $0x8] sm:$0xff]  ;;  %v28_v15 = vld [vmem:[%s153_s2 + $0x18] sm:$0xff] }
  0x92   :  { %v60_v18 = vadd.f32 %v59_v16, %v26_v14  ;;  %v65_v19 = vadd.f32 %v64_v17, %v28_v15 }
  0x94   :  { %68 = vst [vmem:[%s154_s3 + $0x8] sm:$0xff] %v60_v18 }
  0x95   :  { %70 = vst [vmem:[%s154_s3 + $0x18] sm:$0xff] %v65_v19 }

// kernel: thstnet_fwd.2
= control target key start
LH: loop header
LB: loop body
LE: loop exit
PB: predicated region body
PF: predicated region fallthrough
CT: control target
= control target key end

     0   :  { %vm34_vm0 = vcmask 64512   ;;  %v498_v4 = vmov 0.0   ;;  %vm97_vm1 = vcmask 523264   ;;  %s499_s11 = smov 24   ;;  %vm393_vm11 = vcmask 130048   ;;  %s687_s4 = inlined_call_operand.vmem [shape: bf16[64,8], index: 4, kind: input, shape index: {}]   ;;  %s688_s6 = inlined_call_operand.vmem [shape: bf16[64,8], index: 6, kind: input, shape index: {}]   ;;  %s689_s1 = inlined_call_operand.vmem [shape: bf16[32,64], index: 1, kind: input, shape index: {}]   ;;  %s690_s2 = inlined_call_operand.vmem [shape: bf16[32,64], index: 2, kind: input, shape index: {}]   ;;  %s691_s0 = inlined_call_operand.vmem [shape: bf16[32,64], index: 0, kind: input, shape index: {}]   ;;  %s692_s5 = inlined_call_operand.vmem [shape: f32[1,8], index: 5, kind: input, shape index: {}]   ;;  %s693_s7 = inlined_call_operand.vmem [shape: f32[1,8], index: 7, kind: input, shape index: {}]   ;;  %s694_s3 = inlined_call_operand.vmem [shape: f32[32,8], index: 3, kind: input, shape index: {}]   ;;  %s695_s8 = inlined_call_operand.vmem [shape: f32[32,32], index: 8, kind: output, shape index: {}]  }
   0x1   :  { %v477_v0 = vld [vmem:[%s687_s4 + $0x18] sm:$0xff]  ;;  %v476_v2 = vld [vmem:[%s687_s4 + $0x10] sm:$0xff]  ;;  %39 = vst.msk [vmem:[#allocation3] sm:$0xff] %vm34_vm0, %v498_v4  ;;  %v475_v5 = vld [vmem:[%s687_s4 + $0x8] sm:$0xff]  ;;  %vm398_vm12 = vcmask 195584   ;;  %vm403_vm13 = vcmask 261120  }
   0x2   :  { %v487_v1 = vld [vmem:[%s688_s6 + $0x18] sm:$0xff]  ;;  %160 = vmatpush.bf16.msra.mxu1 %v477_v0  ;;  %v486_v3 = vld [vmem:[%s688_s6 + $0x10] sm:$0xff]  ;;  %108 = vmatpush.bf16.msra.mxu0 %v477_v0  ;;  %35 = vst.msk [vmem:[#allocation2] sm:$0xff] %vm34_vm0, %v498_v4  ;;  %v485_v6 = vld [vmem:[%s688_s6 + $0x8] sm:$0xff] }
   0x3   :  { %243 = vmatpush.bf16.msra.mxu2 %v487_v1  ;;  %488 = vmatpush.bf16.msra.mxu3 %v477_v0  ;;  %36 = vst.msk [vmem:[#allocation2 + $0x8] sm:$0xff] %vm34_vm0, %v498_v4  ;;  %v474_v7 = vld [vmem:[%s687_s4] sm:$0xff]  ;;  %v481_v12 = vld [vmem:[%s689_s1 + $0x8] sm:$0xff]  ;;  %v340_v59 = vld [vmem:[%s694_s3 + $0x18] sm:$0xff] }
   0x4   :  { %37 = vst.msk [vmem:[#allocation2 + $0x10] sm:$0xff] %vm34_vm0, %v498_v4  ;;  %v484_v8 = vld [vmem:[%s688_s6] sm:$0xff]  ;;  %v483_v13 = vld [vmem:[%s690_s2 + $0x8] sm:$0xff] }
   0x5   :  { %38 = vst.msk [vmem:[#allocation2 + $0x18] sm:$0xff] %vm34_vm0, %v498_v4  ;;  %v480_v9 = vld [vmem:[%s689_s1] sm:$0xff]  ;;  %v479_v14 = vld [vmem:[%s691_s0 + $0x8] sm:$0xff] }
   0x6   :  { %161 = vmatpush.bf16.msra.mxu1 %v476_v2  ;;  %109 = vmatpush.bf16.msra.mxu0 %v476_v2  ;;  %40 = vst.msk [vmem:[#allocation3 + $0x8] sm:$0xff] %vm34_vm0, %v498_v4  ;;  %v482_v10 = vld [vmem:[%s690_s2] sm:$0xff] }
   0x7   :  { %244 = vmatpush.bf16.msra.mxu2 %v486_v3  ;;  %489 = vmatpush.bf16.msra.mxu3 %v476_v2  ;;  %41 = vst.msk [vmem:[#allocation3 + $0x10] sm:$0xff] %vm34_vm0, %v498_v4  ;;  %v478_v11 = vld [vmem:[%s691_s0] sm:$0xff] }
   0x8   :  { %42 = vst.msk [vmem:[#allocation3 + $0x18] sm:$0xff] %vm34_vm0, %v498_v4  ;;  %v337_v15 = vld [vmem:[%s694_s3] sm:$0xff] }
   0x9   :  { %43 = vst.msk [vmem:[#allocation4] sm:$0xff] %vm34_vm0, %v498_v4  ;;  %377 = vrot.lane.b32.xlu2 %v337_v15, %s499_s11  ;;  %v132_v16 = vld [vmem:[#allocation3] sm:$0xff] }
   0xa   :  { %162 = vmatpush.bf16.msra.mxu1 %v475_v5  ;;  %110 = vmatpush.bf16.msra.mxu0 %v475_v5  ;;  %44 = vst.msk [vmem:[#allocation4 + $0x8] sm:$0xff] %vm34_vm0, %v498_v4  ;;  %v609_v23 = vld [vmem:[%s692_s5] ss:$0 sm:$0xff]  ;;  %s500_s5 = smov 16  }
   0xb   :  { %245 = vmatpush.bf16.msra.mxu2 %v485_v6  ;;  %490 = vmatpush.bf16.msra.mxu3 %v475_v5  ;;  %45 = vst.msk [vmem:[#allocation4 + $0x10] sm:$0xff] %vm34_vm0, %v498_v4  ;;  %v617_v30 = vld [vmem:[%s693_s7] ss:$0 sm:$0xff]  ;;  %s501_s7 = smov 8  }
   0xc   :  { %46 = vst.msk [vmem:[#allocation4 + $0x18] sm:$0xff] %vm34_vm0, %v498_v4 }
   0xd   :  { %v133_v21 = vld [vmem:[#allocation3 + $0x8] sm:$0xff] }
   0xe   :  { %163 = vmatpush.bf16.msra.mxu1 %v474_v7  ;;  %111 = vmatpush.bf16.msra.mxu0 %v474_v7  ;;  %v134_v32 = vld [vmem:[#allocation3 + $0x10] sm:$0xff] }
   0xf   :  { %246 = vmatpush.bf16.msra.mxu2 %v484_v8  ;;  %491 = vmatpush.bf16.msra.mxu3 %v474_v7  ;;  %v135_v46 = vld [vmem:[#allocation3 + $0x18] sm:$0xff]  ;;  %v338_v7 = vld [vmem:[%s694_s3 + $0x8] sm:$0xff] }
  0x10   :  { %v183_v19 = vld [vmem:[#allocation4] sm:$0xff] }
  0x11   :  { %446 = vmatmul.msk.bf16.vlgmr.msra.gmra.mxu1 %vm97_vm1, %v480_v9  ;;  %436 = vmatmul.msk.bf16.vlgmr.msra.gmra.mxu0 %vm97_vm1, %v478_v11  ;;  %v184_v28 = vld [vmem:[#allocation4 + $0x8] sm:$0xff] }
  0x12   :  { %472 = vmatmul.msk.bf16.vlgmr.msra.gmra.mxu2 %vm97_vm1, %v482_v10  ;;  %437 = vmatmul.msk.bf16.vlgmr.msra.gmra.mxu3 %vm97_vm1, %v479_v14  ;;  %v185_v42 = vld [vmem:[#allocation4 + $0x10] sm:$0xff] }
  0x13   :  { %v186_v55 = vld [vmem:[#allocation4 + $0x18] sm:$0xff] }
  0x21   :  { %447 = vmatmul.msk.bf16.gmra.mxu1 %vm97_vm1, %v481_v12  ;;  %v339_v12 = vld [vmem:[%s694_s3 + $0x10] sm:$0xff] }
  0x22   :  { %473 = vmatmul.msk.bf16.gmra.mxu2 %vm97_vm1, %v483_v13  ;;  %v55_v13 = vld [vmem:[#allocation2] sm:$0xff] }
  0x8e   :  { %v165_v17 = vpop.f32.mrf.mxu1  ;;  %v113_v14 = vpop.f32.mrf.mxu0 }
  0x8f   :  { %v175_v18 = vadd.f32 %v165_v17, %v132_v16  ;;  %v123_v15 = vadd.f32 %v113_v14, %v55_v13  ;;  %v56_v16 = vld [vmem:[#allocation2 + $0x8] sm:$0xff] }
  0x91   :  { %179 = vst.msk [vmem:[#allocation3] sm:$0xff] %vm34_vm0, %v175_v18 }
  0x92   :  { %128 = vst.msk [vmem:[#allocation2] sm:$0xff] %vm34_vm0, %v123_v15 }
  0x95   :  { %v248_v20 = vpop.f32.mrf.mxu2 }
  0x96   :  { %v258_v22 = vadd.f32 %v248_v20, %v183_v19  ;;  %v167_v24 = vpop.f32.mrf.mxu1  ;;  %v115_v17 = vpop.f32.mrf.mxu0  ;;  %v57_v19 = vld [vmem:[#allocation2 + $0x10] sm:$0xff] }
  0x97   :  { %v176_v25 = vadd.f32 %v167_v24, %v133_v21  ;;  %v124_v18 = vadd.f32 %v115_v17, %v56_v16  ;;  %v118_v20 = vpop.f32.mrf.mxu3 }
  0x98   :  { %262 = vst.msk [vmem:[#allocation4] sm:$0xff] %vm34_vm0, %v258_v22  ;;  %v317_v26 = vld [vmem:[#allocation3] sm:$0xff]  ;;  %v125_v21 = vadd.f32 %v118_v20, %v57_v19  ;;  %v58_v22 = vld [vmem:[#allocation2 + $0x18] sm:$0xff] }
  0x99   :  { %180 = vst.msk [vmem:[#allocation3 + $0x8] sm:$0xff] %vm34_vm0, %v176_v25  ;;  %v321_v27 = vadd.f32 %v609_v23, %v317_v26  ;;  %v269_v26 = vld [vmem:[#allocation2] sm:$0xff] }
  0x9a   :  { %129 = vst.msk [vmem:[#allocation2 + $0x8] sm:$0xff] %vm34_vm0, %v124_v18 }
  0x9b   :  { %vm325_vm2 = vcmp.ge.f32.partialorder %v321_v27, 0.0  ;;  %v329_v29 = vmul.f32 0.01, %v321_v27  ;;  %130 = vst.msk [vmem:[#allocation2 + $0x10] sm:$0xff] %vm34_vm0, %v125_v21 }
  0x9d   :  { %v250_v31 = vpop.f32.mrf.mxu2  ;;  %v333_v34 = vsel %vm325_vm2, %v321_v27, %v329_v29  ;;  %v277_v27 = vadd.f32 %v609_v23, %v269_v26 }
  0x9e   :  { %v259_v33 = vadd.f32 %v250_v31, %v184_v28  ;;  %361 = vrot.lane.b32.xlu2 %v333_v34, %s500_s5  ;;  %v170_v35 = vpop.f32.mrf.mxu1  ;;  %v378_v28 = vpop.permute.xlu2 %377 }
  0x9f   :  { %v293_v36 = vld [vmem:[#allocation4] sm:$0xff]  ;;  %v177_v37 = vadd.f32 %v170_v35, %v134_v32  ;;  %v120_v24 = vpop.f32.mrf.mxu3  ;;  %v285_v29 = vmul.f32 0.01, %v277_v27  ;;  %vm281_vm10 = vcmp.ge.f32.partialorder %v277_v27, 0.0 }
  0xa0   :  { %263 = vst.msk [vmem:[#allocation4 + $0x8] sm:$0xff] %vm34_vm0, %v259_v33  ;;  %v301_v38 = vadd.f32 %v617_v30, %v293_v36  ;;  %v318_v39 = vld [vmem:[#allocation3 + $0x8] sm:$0xff]  ;;  %v126_v25 = vadd.f32 %v120_v24, %v58_v22 }
  0xa1   :  { %181 = vst.msk [vmem:[#allocation3 + $0x10] sm:$0xff] %vm34_vm0, %v177_v37  ;;  %v322_v41 = vadd.f32 %v609_v23, %v318_v39  ;;  %v270_v36 = vld [vmem:[#allocation2 + $0x8] sm:$0xff] }
  0xa2   :  { %vm305_vm3 = vcmp.ge.f32.partialorder %v301_v38, 0.0  ;;  %v309_v40 = vmul.f32 0.01, %v301_v38  ;;  %131 = vst.msk [vmem:[#allocation2 + $0x18] sm:$0xff] %vm34_vm0, %v126_v25 }
  0xa3   :  { %vm326_vm4 = vcmp.ge.f32.partialorder %v322_v41, 0.0  ;;  %v330_v44 = vmul.f32 0.01, %v322_v41 }
  0xa4   :  { %v313_v43 = vsel %vm305_vm3, %v301_v38, %v309_v40  ;;  %v278_v38 = vadd.f32 %v609_v23, %v270_v36 }
  0xa5   :  { %345 = vrot.lane.b32.xlu0 %v313_v43, %s501_s7  ;;  %v253_v45 = vpop.f32.mrf.mxu2  ;;  %v334_v48 = vsel %vm326_vm4, %v322_v41, %v330_v44 }
  0xa6   :  { %v260_v47 = vadd.f32 %v253_v45, %v185_v42  ;;  %363 = vrot.lane.b32.xlu2 %v334_v48, %s500_s5  ;;  %v172_v49 = vpop.f32.mrf.mxu1  ;;  %v286_v39 = vmul.f32 0.01, %v278_v38  ;;  %vm282_vm14 = vcmp.ge.f32.partialorder %v278_v38, 0.0 }
  0xa7   :  { %v294_v50 = vld [vmem:[#allocation4 + $0x8] sm:$0xff]  ;;  %v178_v51 = vadd.f32 %v172_v49, %v135_v46  ;;  %v271_v46 = vld [vmem:[#allocation2 + $0x10] sm:$0xff] }
  0xa8   :  { %264 = vst.msk [vmem:[#allocation4 + $0x10] sm:$0xff] %vm34_vm0, %v260_v47  ;;  %v302_v52 = vadd.f32 %v617_v30, %v294_v50  ;;  %v319_v53 = vld [vmem:[#allocation3 + $0x10] sm:$0xff]  ;;  %v290_v42 = vsel %vm282_vm14, %v278_v38, %v286_v39 }
  0xa9   :  { %182 = vst.msk [vmem:[#allocation3 + $0x18] sm:$0xff] %vm34_vm0, %v178_v51  ;;  %v323_v57 = vadd.f32 %v609_v23, %v319_v53  ;;  %v272_v44 = vld [vmem:[#allocation2 + $0x18] sm:$0xff] }
  0xaa   :  { %vm306_vm5 = vcmp.ge.f32.partialorder %v302_v52, 0.0  ;;  %v310_v54 = vmul.f32 0.01, %v302_v52  ;;  %v280_v50 = vadd.f32 %v609_v23, %v272_v44 }
  0xab   :  { %v331_v63 = vmul.f32 0.01, %v323_v57  ;;  %vm327_vm6 = vcmp.ge.f32.partialorder %v323_v57, 0.0 }
  0xac   :  { %v314_v56 = vsel %vm306_vm5, %v302_v52, %v310_v54  ;;  %v279_v52 = vadd.f32 %v609_v23, %v271_v46  ;;  %v288_v53 = vmul.f32 0.01, %v280_v50  ;;  %vm284_vm15 = vcmp.ge.f32.partialorder %v280_v50, 0.0 }
  0xad   :  { %347 = vrot.lane.b32.xlu0 %v314_v56, %s501_s7  ;;  %v255_v58 = vpop.f32.mrf.mxu2  ;;  %v335_v3 = vsel %vm327_vm6, %v323_v57, %v331_v63 }
  0xae   :  { %v261_v60 = vadd.f32 %v255_v58, %v186_v55  ;;  %383 = vrot.lane.b32.xlu2 %v340_v59, %s499_s11  ;;  %v287_v54 = vmul.f32 0.01, %v279_v52  ;;  %vm283_vm1 = vcmp.ge.f32.partialorder %v279_v52, 0.0  ;;  %v292_v56 = vsel %vm284_vm15, %v280_v50, %v288_v53 }
  0xaf   :  { %v295_v61 = vld [vmem:[#allocation4 + $0x10] sm:$0xff] }
  0xb0   :  { %265 = vst.msk [vmem:[#allocation4 + $0x18] sm:$0xff] %vm34_vm0, %v261_v60  ;;  %v303_v62 = vadd.f32 %v617_v30, %v295_v61  ;;  %v320_v0 = vld [vmem:[#allocation3 + $0x18] sm:$0xff]  ;;  %v291_v59 = vsel %vm283_vm1, %v279_v52, %v287_v54 }
  0xb1   :  { %v324_v4 = vadd.f32 %v609_v23, %v320_v0 }
  0xb2   :  { %vm307_vm7 = vcmp.ge.f32.partialorder %v303_v62, 0.0  ;;  %v311_v1 = vmul.f32 0.01, %v303_v62 }
  0xb3   :  { %v332_v5 = vmul.f32 0.01, %v324_v4  ;;  %vm328_vm8 = vcmp.ge.f32.partialorder %v324_v4, 0.0 }
  0xb4   :  { %v315_v2 = vsel %vm307_vm7, %v303_v62, %v311_v1 }
  0xb5   :  { %349 = vrot.lane.b32.xlu1 %v315_v2, %s501_s7  ;;  %365 = vrot.lane.b32.xlu0 %v335_v3, %s500_s5  ;;  %v336_v8 = vsel %vm328_vm8, %v324_v4, %v332_v5 }
  0xb7   :  { %v296_v6 = vld [vmem:[#allocation4 + $0x18] sm:$0xff] }
  0xb8   :  { %v304_v9 = vadd.f32 %v617_v30, %v296_v6  ;;  %v289_v30 = vsel %vm281_vm10, %v277_v27, %v285_v29 }
  0xba   :  { %v312_v10 = vmul.f32 0.01, %v304_v9  ;;  %vm308_vm9 = vcmp.ge.f32.partialorder %v304_v9, 0.0 }
  0xbc   :  { %v316_v11 = vsel %vm308_vm9, %v304_v9, %v312_v10 }
  0xbd   :  { %379 = vrot.lane.b32.xlu0 %v338_v7, %s499_s11  ;;  %367 = vrot.lane.b32.xlu1 %v336_v8, %s500_s5 }
  0xc5   :  { %351 = vrot.lane.b32.xlu1 %v316_v11, %s501_s7 }
  0xcd   :  { %381 = vrot.lane.b32.xlu1 %v339_v12, %s499_s11 }
  0xf8   :  { %v362_v32 = vpop.permute.xlu2 %361 }
 0x100   :  { %v364_v45 = vpop.permute.xlu2 %363 }
 0x108   :  { %v384_v57 = vpop.permute.xlu2 %383 }
 0x117   :  { %v346_v31 = vpop.permute.xlu0 %345 }
 0x118   :  { %v389_v33 = vsel %vm34_vm0, %v289_v30, %v346_v31 }
 0x119   :  { %v394_v34 = vsel %vm393_vm11, %v389_v33, %v362_v32 }
 0x11a   :  { %v399_v35 = vsel %vm398_vm12, %v394_v34, %v378_v28 }
 0x11b   :  { %404 = vst.msk [vmem:[%s695_s8] sm:$0xff] %vm403_vm13, %v399_v35 }
 0x11f   :  { %v348_v37 = vpop.permute.xlu0 %347 }
 0x120   :  { %v390_v43 = vsel %vm34_vm0, %v290_v42, %v348_v37 }
 0x121   :  { %v395_v48 = vsel %vm393_vm11, %v390_v43, %v364_v45 }
 0x127   :  { %v350_v40 = vpop.permute.xlu1 %349  ;;  %v366_v41 = vpop.permute.xlu0 %365 }
 0x128   :  { %v391_v23 = vsel %vm34_vm0, %v291_v59, %v350_v40 }
 0x129   :  { %v396_v62 = vsel %vm393_vm11, %v391_v23, %v366_v41 }
 0x12f   :  { %v380_v47 = vpop.permute.xlu0 %379  ;;  %v368_v49 = vpop.permute.xlu1 %367 }
 0x130   :  { %v400_v51 = vsel %vm398_vm12, %v395_v48, %v380_v47 }
 0x131   :  { %405 = vst.msk [vmem:[%s695_s8 + $0x8] sm:$0xff] %vm403_vm13, %v400_v51 }
 0x137   :  { %v352_v55 = vpop.permute.xlu1 %351 }
 0x138   :  { %v392_v58 = vsel %vm34_vm0, %v292_v56, %v352_v55 }
 0x139   :  { %v397_v60 = vsel %vm393_vm11, %v392_v58, %v368_v49 }
 0x13a   :  { %v402_v61 = vsel %vm398_vm12, %v397_v60, %v384_v57 }
 0x13b   :  { %407 = vst.msk [vmem:[%s695_s8 + $0x18] sm:$0xff] %vm403_vm13, %v402_v61 }
 0x13f   :  { %v382_v63 = vpop.permute.xlu1 %381 }
 0x140   :  { %v401_v0 = vsel %vm398_vm12, %v396_v62, %v382_v63 }
 0x141   :  { %406 = vst.msk [vmem:[%s695_s8 + $0x10] sm:$0xff] %vm403_vm13, %v401_v0 }

</bundles_post_ra>
